<compile_context>
chip_gen: v5e
topology: v5e:2x2
jax: 0.10.0
libtpu: 0.0.40
codegen_flags: <defaults>
</compile_context>

<pallas_src>
import jax
import jax.numpy as jnp
from jax.experimental import pallas as pl
from jax.experimental.pallas import tpu as pltpu


def scaled_bell_distribution_capped_at_2_times_sigma(key, width, mean, sigma):
    """Deterministic stand-in for the PyTorch init: N(mean, sigma) capped at mean +/- 2*sigma."""
    vals = mean + sigma * jax.random.normal(key, (width,), dtype=jnp.float32)
    return jnp.clip(vals, mean - 2.0 * sigma, mean + 2.0 * sigma)


def linear_gated_kernel(x_ref, p_ref, params_ref, act_ref, pot_ref):
    # potential = potential + x
    potential = p_ref[...] + x_ref[...]
    tresh = params_ref[0:1, :]   # (1, tw) -> broadcast over rows
    decay = params_ref[1:2, :]
    # gated = relu(potential - tresh); neuron "fires" iff gated > 0 iff (potential - tresh) > 0
    fired = (potential - tresh) > 0.0
    # activated = InvertedBump(gated) * potential  -> potential where fired, else 0
    act_ref[...] = jnp.where(fired, potential, 0.0)
    # potential_non_gated = (Bump(gated) * potential) * decay -> potential * decay where NOT fired
    pot_ref[...] = jnp.where(fired, 0.0, potential * decay)


_TARGET_BLOCK_BYTES = 4 * 1024 * 1024   # ~4 MiB/block: 4 streams x 2 bufs ~= 32 MiB (v7x-safe)
_MAX_TW = 2048
_MAX_TB = 1024


def _choose_tiles(batch, width, itemsize):
    # Sublane granularity is dtype dependent: 8 rows f32, 16 bf16, 32 int8/fp8.
    sub = max(8, 32 // itemsize)

    # ---- width tile: lane-dense (multiple of 128) or the full width ----
    if width % 128 == 0 and width > _MAX_TW:
        tw = 128
        for cand in range(_MAX_TW, 127, -128):
            if width % cand == 0:
                tw = cand
                break
    else:
        tw = width  # full width is always a legal block dim
        if sub * tw * itemsize > 2 * _TARGET_BLOCK_BYTES:
            # Huge non-128-multiple width: tile anyway (ragged last width block is
            # masked by Pallas) so double-buffered VMEM usage stays bounded.
            tw = _MAX_TW

    # ---- row tile: near the byte target, multiple of sub, low ragged waste ----
    tb_cap = max(sub, (_TARGET_BLOCK_BYTES // max(1, tw * itemsize)) // sub * sub)
    tb_cap = min(tb_cap, _MAX_TB)
    b_ceil = -(-batch // sub) * sub
    tb_cap = min(tb_cap, b_ceil)
    tol = max(sub - 1, int(0.05 * batch))   # allow <= ~5% wasted (masked) rows
    tb = sub
    for cand in range(tb_cap, sub - 1, -sub):
        waste = -(-batch // cand) * cand - batch
        if waste <= tol:
            tb = cand
            break

    # ---- v7x megacore: ensure >= 2 blocks so both TensorCores get work ----
    def n_blocks(tb_, tw_):
        return (-(-width // tw_)) * (-(-batch // tb_))

    while n_blocks(tb, tw) < 2:
        if tb > sub:
            tb = max(sub, ((tb // 2) // sub) * sub)
        elif tw % 256 == 0:
            tw //= 2
        else:
            break   # problem genuinely fits one tiny block
    return tb, tw


def linear_gated(x, potential, tresh, decay_rate):
    B, W = x.shape
    assert potential.shape == (B, W)
    dtype = x.dtype
    itemsize = jnp.dtype(dtype).itemsize

    tb, tw = _choose_tiles(B, W, itemsize)

    # Width blocks on the SLOW axis: the params tile index only changes when the
    # width block changes, so it stays resident across all batch steps.
    grid = (pl.cdiv(W, tw), pl.cdiv(B, tb))

    # Merge per-feature params into one (2, W) operand: row 0 = tresh, row 1 = decay.
    params = jnp.stack([tresh.astype(dtype), decay_rate.astype(dtype)], axis=0)

    row_spec = pl.BlockSpec((tb, tw), lambda j, i: (i, j))
    par_spec = pl.BlockSpec((2, tw), lambda j, i: (0, j))

    out_shapes = (
        jax.ShapeDtypeStruct((B, W), dtype),
        jax.ShapeDtypeStruct((B, W), dtype),
    )

    # Explicit VMEM budget: 2 inputs + 2 outputs double-buffered + params + slack.
    block_bytes = tb * tw * itemsize
    vmem_bytes = 2 * 4 * block_bytes + 2 * (2 * tw * itemsize) + (2 << 20)
    vmem_limit = int(min(max(vmem_bytes, 16 << 20), 48 << 20))

    activated, potential_non_gated = pl.pallas_call(
        linear_gated_kernel,
        out_shape=out_shapes,
        grid_spec=pltpu.PrefetchScalarGridSpec(
            num_scalar_prefetch=0,
            grid=grid,
            in_specs=[row_spec, row_spec, par_spec],
            out_specs=[row_spec, row_spec],
        ),
        # Stateful-update pattern: reuse x's buffer for `activated` and potential's
        # buffer for the decayed potential (XLA copies defensively if the caller's
        # buffers cannot be donated, so this is always correct).
        input_output_aliases={0: 0, 1: 1},
        compiler_params=pltpu.CompilerParams(
            dimension_semantics=("parallel", "parallel"),
            vmem_limit_bytes=vmem_limit,
        ),
    )(x, potential, params)

    return activated, potential_non_gated


def linear_gated_ref(x, potential, tresh, decay_rate):
    """Pure-JAX reference for the PyTorch forward."""
    potential = potential + x
    treshed = potential - tresh[None, :]
    gated = jnp.maximum(treshed, 0.0)
    gated_bool = (gated > 0.0).astype(x.dtype)
    activated = gated_bool * potential
    non_gated_bool = 1.0 - gated_bool
    non_gated = potential * non_gated_bool
    potential_non_gated = non_gated * decay_rate[None, :]
    return activated, potential_non_gated


if __name__ == "__main__":
    key = jax.random.PRNGKey(0)
    k_x, k_p, k_t, k_d = jax.random.split(key, 4)

    # Small shapes; batch deliberately NOT a multiple of 8 to exercise the
    # ragged (masked) last row block -- no wrapper-side padding or slicing.
    batch, width = 12, 256
    x = jax.random.normal(k_x, (batch, width), dtype=jnp.float32)
    potential = jax.random.normal(k_p, (batch, width), dtype=jnp.float32)

    tresh = scaled_bell_distribution_capped_at_2_times_sigma(k_t, width, 0.3, 0.05)
    decay_rate = scaled_bell_distribution_capped_at_2_times_sigma(k_d, width, 0.7, 0.1)

    # Compute reference first (kernel may alias/donate the input buffers).
    act_ref, pot_ref = linear_gated_ref(x, potential, tresh, decay_rate)

    act, pot_ng = linear_gated(x, potential, tresh, decay_rate)
    act = jax.block_until_ready(act)
    pot_ng = jax.block_until_ready(pot_ng)

    assert act.shape == (batch, width) and pot_ng.shape == (batch, width)
    assert jnp.allclose(act, act_ref, atol=1e-6), "activated mismatch"
    assert jnp.allclose(pot_ng, pot_ref, atol=1e-6), "potential_non_gated mismatch"

    print("KERNEL_OK")
</pallas_src>

<mosaic_0001>
module attributes {stable_mosaic.version = 11 : i64} {
  func.func @linear_gated_kernel(%arg0: i32, %arg1: i32, %arg2: memref<8x256xf32, #tpu.memory_space<vmem>>, %arg3: memref<8x256xf32, #tpu.memory_space<vmem>>, %arg4: memref<2x256xf32, #tpu.memory_space<vmem>>, %arg5: memref<8x256xf32, #tpu.memory_space<vmem>>, %arg6: memref<8x256xf32, #tpu.memory_space<vmem>>) attributes {dimension_semantics = [#tpu.dimension_semantics<parallel>, #tpu.dimension_semantics<parallel>], iteration_bounds = array<i64: 1, 2>, scalar_prefetch = 0 : i64, scratch_operands = 0 : i64, tpu.core_type = #tpu.core_type<tc>, window_params = [{transform_indices = @transform_0, window_bounds = array<i64: 8, 256>}, {transform_indices = @transform_1, window_bounds = array<i64: 8, 256>}, {transform_indices = @transform_2, window_bounds = array<i64: 2, 256>}, {transform_indices = @transform_3, window_bounds = array<i64: 8, 256>}, {transform_indices = @transform_4, window_bounds = array<i64: 8, 256>}]} {
    %c0 = arith.constant 0 : index
    %c0_0 = arith.constant 0 : index
    %0 = vector.load %arg3[%c0, %c0_0] : memref<8x256xf32, #tpu.memory_space<vmem>>, vector<8x256xf32>
    %c0_1 = arith.constant 0 : index
    %c0_2 = arith.constant 0 : index
    %1 = vector.load %arg2[%c0_1, %c0_2] : memref<8x256xf32, #tpu.memory_space<vmem>>, vector<8x256xf32>
    %2 = arith.addf %0, %1 : vector<8x256xf32>
    %c0_3 = arith.constant 0 : index
    %c0_4 = arith.constant 0 : index
    %3 = vector.load %arg4[%c0_3, %c0_4] : memref<2x256xf32, #tpu.memory_space<vmem>>, vector<1x256xf32>
    %c1 = arith.constant 1 : index
    %c0_5 = arith.constant 0 : index
    %4 = vector.load %arg4[%c1, %c0_5] : memref<2x256xf32, #tpu.memory_space<vmem>>, vector<1x256xf32>
    %5 = vector.broadcast %3 : vector<1x256xf32> to vector<8x256xf32>
    %6 = arith.subf %2, %5 : vector<8x256xf32>
    %cst = arith.constant 0.000000e+00 : f32
    %7 = vector.broadcast %cst : f32 to vector<8x256xf32>
    %8 = arith.cmpf ogt, %6, %7 : vector<8x256xf32>
    %cst_6 = arith.constant 0.000000e+00 : f32
    %9 = vector.broadcast %cst_6 : f32 to vector<8x256xf32>
    %10 = arith.select %8, %2, %9 : vector<8x256xi1>, vector<8x256xf32>
    %c0_7 = arith.constant 0 : index
    %c0_8 = arith.constant 0 : index
    %11 = vector.load %arg5[%c0_7, %c0_8] : memref<8x256xf32, #tpu.memory_space<vmem>>, vector<8x256xf32>
    tpu.vector_store %arg5[%c0_7, %c0_8], %10 {strides = array<i32>} : memref<8x256xf32, #tpu.memory_space<vmem>>, vector<8x256xf32>,
    %12 = vector.broadcast %4 : vector<1x256xf32> to vector<8x256xf32>
    %13 = arith.mulf %2, %12 : vector<8x256xf32>
    %cst_9 = arith.constant 0.000000e+00 : f32
    %14 = vector.broadcast %cst_9 : f32 to vector<8x256xf32>
    %15 = arith.select %8, %14, %13 : vector<8x256xi1>, vector<8x256xf32>
    %c0_10 = arith.constant 0 : index
    %c0_11 = arith.constant 0 : index
    %16 = vector.load %arg6[%c0_10, %c0_11] : memref<8x256xf32, #tpu.memory_space<vmem>>, vector<8x256xf32>
    tpu.vector_store %arg6[%c0_10, %c0_11], %15 {strides = array<i32>} : memref<8x256xf32, #tpu.memory_space<vmem>>, vector<8x256xf32>,
    return
  }
  func.func @transform_0(%arg0: i32, %arg1: i32) -> (i32, i32) {
    %c0_i32 = arith.constant 0 : i32
    return %arg1, %arg0 : i32, i32
  }
  func.func @transform_1(%arg0: i32, %arg1: i32) -> (i32, i32) {
    %c0_i32 = arith.constant 0 : i32
    return %arg1, %arg0 : i32, i32
  }
  func.func @transform_2(%arg0: i32, %arg1: i32) -> (i32, i32) {
    %c0_i32 = arith.constant 0 : i32
    %c0_i32_0 = arith.constant 0 : i32
    return %c0_i32, %arg0 : i32, i32
  }
  func.func @transform_3(%arg0: i32, %arg1: i32) -> (i32, i32) {
    %c0_i32 = arith.constant 0 : i32
    return %arg1, %arg0 : i32, i32
  }
  func.func @transform_4(%arg0: i32, %arg1: i32) -> (i32, i32) {
    %c0_i32 = arith.constant 0 : i32
    return %arg1, %arg0 : i32, i32
  }
}

</mosaic_0001>

<bundles_post_ra>
// kernel: tpu_custom_call.1
= control target key start
LH: loop header
LB: loop body
LE: loop exit
PB: predicated region body
PF: predicated region fallthrough
CT: control target
= control target key end

     0   :  { %10 = vsyncpa [#allocation3], 0  ;;  %s1021_s0 = inlined_call_operand.hbm [shape: f32[12,256], index: 0, kind: input, shape index: {}, may-alias: {0,3}]   ;;  %s1022_s1 = inlined_call_operand.hbm [shape: f32[12,256], index: 1, kind: input, shape index: {}, may-alias: {1,4}]   ;;  %s1023_s2 = inlined_call_operand.vmem [shape: f32[2,256], index: 2, kind: input, shape index: {}]   ;;  %s1024_s3 = inlined_call_operand.hbm [shape: f32[12,256], index: 3, kind: output, shape index: {0}, may-alias: {0,3}]   ;;  %s1025_s4 = inlined_call_operand.hbm [shape: f32[12,256], index: 4, kind: output, shape index: {1}, may-alias: {1,4}]  }
   0x1   :  { %12 = vsyncpa [#allocation3 + $0x1], 0 }
   0x2   :  { %13 = vsyncpa [#allocation6], 0 }
   0x3   :  { %15 = vsyncpa [#allocation6 + $0x1], 0 }
   0x4   :  { %16 = vsyncpa [#allocation4], 0 }
   0x5   :  { %18 = vsyncpa [#allocation4 + $0x1], 0 }
   0x6   :  { %19 = vsyncpa [#allocation9], 0 }
   0x7   :  { %21 = vsyncpa [#allocation9 + $0x1], 0  ;;  %s858_s15 = smov 0   ;;  %s860_s16 = smov 0  }
   0x8   :  { %s862_s17 = smov 0   ;;  %s864_s18 = smov 0  }
   0x9   :  { %s866_s19 = smov 0   ;;  %s868_s20 = smov 0  }
   0xa LB: > { %s552_s21 = sadd.s32 4294967295, %s831_s20   ;;  %s553_s22 = sadd.s32 4294967294, %s831_s20   ;;  %s831_s20 = sphi %s868_s20, %s27_s20   ;;  %s827_s19 = sphi %s866_s19, %s1037_s19   ;;  %s823_s18 = sphi %s864_s18, %s1036_s18   ;;  %s819_s17 = sphi %s862_s17, %s1035_s17   ;;  %s815_s16 = sphi %s860_s16, %s1034_s16   ;;  %s811_s15 = sphi %s858_s15, %s1033_s15  }
   0xb   : > { %s36_s23 = sadd.s32 1, %s827_s19  ;;  %s48_s24 = sadd.s32 1, %s819_s17 }
   0xc   : > { %p37_p0 = scmp.ge.s32.totalorder %s36_s23, 2  ;;  %p55_p1 = scmp.ne.s32.totalorder %s819_s17, %s815_s16 }
   0xd   : > { %p56_p2 = scmp.eq.s32.totalorder %s831_s20, 0  ;;  %p61_p3 = scmp.ne.s32.totalorder %s815_s16, %s811_s15 }
   0xe   : > { %s1039_s23 = smov (%p37_p0, %s36_s23), 0  ;;  %p62_p5 = scmp.eq.s32.totalorder %s552_s21, 0 }
   0xf   : > { %1027 = sst [smem:[#allocation14_spill]] %s1039_s23  ;;  %p899_p4 = por %p56_p2, %p55_p1 }
  0x10   : > { %s43_s26 = ssub.s32 %s827_s19, %s1039_s23  ;;  %p141_p6 = scmp.eq.s32.totalorder %s552_s21, 1 }
  0x11   : > { %p46_p7 = scmp.eq.s32.totalorder %s43_s26, 0  ;;  %p905_p8 = por %p62_p5, %p61_p3 }
  0x12   : > { %p909_p9 = por %p141_p6, %p55_p1  ;;  %p147_p10 = scmp.eq.s32.totalorder %s553_s22, 1 }
  0x13   : > { %s914_s29 = scalar_select %p46_p7, %s819_s17, %s48_s24  }
  0x14   : > { %p916_p11 = por %p147_p10, %p61_p3  ;;  %p556_p12 = scmp.ge.s32.totalorder %s831_s20, 2 }
  0x15   : > { %p603_p13 = scmp.lt.s32.totalorder %s831_s20, 2  ;;  %s204_s5 = sand.u32 1, %s819_s17  }
  0x16   : > { %s557_s6 = sshll.u32 %s204_s5, 4  ;;  %s577_s7 = sshll.u32 %s827_s19, 4 }
  0x17   : > { %s215_s10 = scalar_lea.hbm %s1021_s0, %s577_s7  ;;  %s208_s11 = scalar_lea.vmem [#allocation2], %s557_s6 }
  0x18   : > { %s219_s12 = sshll.u32 %s208_s11, 4  ;;  %s217_s13 = sshll.u32 %s215_s10, 4  ;;  %s220_s12 = int_to_ptr.vmem [resolvable:$true] %s219_s12  ;;  %s218_s13 = int_to_ptr.hbm [resolvable:$true] %s217_s13 }
  0x19   : > { %p590_p0 = pnand %p603_p13, %p899_p4  ;;  %p563_p1 = scmp.ge.s32.totalorder %s831_s20, 1 }
  0x1a   : > { %p246_p2 = scmp.lt.s32.totalorder %s831_s20, 3  ;;  %s205_s14 = scalar_lea.sflag [#allocation3], %s204_s5 }
  0x1b   : > { %592 = dma.hbm_to_vmem [thread:$0]  (!%p590_p0), %s218_s13, 256, %s220_s12, %s205_s14  }
  0x1c   : > { %p247_p3 = pnand %p563_p1, %p246_p2  ;;  %s237_s24 = scalar_lea.hbm %s1022_s1, %s577_s7 }
  0x1d   : > { %s230_s26 = scalar_lea.vmem [#allocation5], %s557_s6  ;;  %s239_s8 = sshll.u32 %s237_s24, 4  ;;  %s240_s8 = int_to_ptr.hbm [resolvable:$true] %s239_s8 }
  0x1e   : > { %s241_s23 = sshll.u32 %s230_s26, 4  ;;  %s227_s9 = scalar_lea.sflag [#allocation6], %s204_s5  ;;  %s242_s23 = int_to_ptr.vmem [resolvable:$true] %s241_s23 }
  0x1f   : > { %595 = dma.hbm_to_vmem [thread:$0]  (!%p590_p0), %s240_s8, 256, %s242_s23, %s227_s9  }
  0x20   : > { %250 = sbr.rel (%p247_p3) target bundleno = 69 (0x45), region = 32  ;;  %s935_s25 = sand.u32 (!%p247_p3), 1, %s815_s16  }
  0x21   : > { %s564_s10 = sshll.u32 (!%p247_p3), %s935_s25, 4  ;;  %s253_s11 = scalar_lea.sflag (!%p247_p3), [#allocation3], %s935_s25 }
  0x22   : > { %s256_s12 = scalar_lea.vmem (!%p247_p3), [#allocation2], %s564_s10 }
  0x25   : > { %794 = dma.done.wait (%p905_p8), %s253_s11, 256  }
  0x26   : > { %796 = vsyncadd (%p905_p8), %s253_s11, 4294967040  ;;  %s263_s6 = scalar_lea.sflag [#allocation6], %s935_s25  ;;  %s266_s5 = scalar_lea.vmem [#allocation5], %s564_s10 }
  0x27   : > { %798 = dma.done.wait (%p905_p8), %s263_s6, 256  }
  0x28   : > { %800 = vsyncadd (%p905_p8), %s263_s6, 4294967040  ;;  %s579_s23 = sshll.u32 %s823_s18, 4  ;;  %v317_v0 = vld [vmem:[%s266_s5] sm:$0xff]  ;;  %v318_v5 = vld [vmem:[%s266_s5 + $0x8] sm:$0xff]  ;;  %s299_s24 = scalar_lea.vmem [#allocation7], %s564_s10 }
  0x29   : > { %v319_v1 = vld [vmem:[%s256_s12] sm:$0xff]  ;;  %s369_s22 = scalar_lea.hbm %s1024_s3, %s579_s23  ;;  %v320_v6 = vld [vmem:[%s256_s12 + $0x8] sm:$0xff]  ;;  %s371_s27 = sshll.u32 %s299_s24, 4  ;;  %s964_s27 = int_to_ptr.vmem [resolvable:$true] %s371_s27 }
  0x2a   : > { %v323_v2 = vld [vmem:[%s1023_s2] ss:$2 sm:$0x3]  ;;  %v321_v3 = vadd.f32 %v319_v1, %v317_v0  ;;  %v322_v8 = vadd.f32 %v320_v6, %v318_v5  ;;  %v568_v9 = vld [vmem:[%s1023_s2 + $0x1] ss:$2 sm:$0x3]  ;;  %s386_s11 = scalar_lea.hbm %s1025_s4, %s579_s23 }
  0x2b   : > { %v327_v4 = vperm.slane %v323_v2, 0  ;;  %v328_v7 = vperm.slane %v323_v2, 1  ;;  %v340_v11 = vperm.slane %v568_v9, 0  ;;  %v341_v12 = vperm.slane %v568_v9, 1  ;;  %s373_s6 = sshll.u32 %s369_s22, 4  ;;  %s961_s7 = scalar_lea.vmem [#allocation8], %s564_s10  ;;  %s374_s6 = int_to_ptr.hbm [resolvable:$true] %s373_s6 }
  0x2c   : > { %s388_s12 = sshll.u32 %s961_s7, 4  ;;  %s390_s5 = sshll.u32 %s386_s11, 4  ;;  %s966_s12 = int_to_ptr.vmem [resolvable:$true] %s388_s12  ;;  %s968_s5 = int_to_ptr.hbm [resolvable:$true] %s390_s5 }
  0x2d   : > { %v331_v10 = vsub.f32 %v321_v3, %v327_v4  ;;  %v332_v13 = vsub.f32 %v322_v8, %v328_v7  ;;  %v344_v14 = vmul.f32 %v340_v11, %v321_v3  ;;  %v345_v15 = vmul.f32 %v341_v12, %v322_v8  ;;  %s351_s10 = scalar_lea.sflag [#allocation4], %s935_s25  ;;  %s727_s23 = sshra.s32 %s374_s6, 4  ;;  %s728_s23 = int_to_ptr.hbm [resolvable:$true] %s727_s23 }
  0x2e   : > { %s729_s13 = scalar_lea.hbm %s728_s23, 16  ;;  %s733_s22 = scalar_lea.hbm %s1024_s3, 32 }
  0x2f   : > { %vm333_vm0 = vcmp.gt.f32.partialorder %v331_v10, 0.0  ;;  %vm334_vm1 = vcmp.gt.f32.partialorder %v332_v13, 0.0  ;;  %p730_p4 = scmp.ne.s32.totalorder %s728_s23, %s729_s13  ;;  %p734_p7 = scmp.lt.s32.totalorder %s728_s23, %s1024_s3 }
  0x30   : > { %v335_v16 = vsel %vm333_vm0, %v321_v3, 0.0  ;;  %v336_v17 = vsel %vm334_vm1, %v322_v8, 0.0  ;;  %v346_v18 = vsel %vm333_vm0, 0.0, %v344_v14  ;;  %v347_v19 = vsel %vm334_vm1, 0.0, %v345_v15  ;;  %p735_p8 = scmp.lt.s32.totalorder %s733_s22, %s729_s13 }
  0x31   : > { %337 = vst [vmem:[%s299_s24] sm:$0xff] %v335_v16  ;;  %p731_p5 = pnand %p730_p4, %p909_p9 }
  0x32   : > { %338 = vst [vmem:[%s299_s24 + $0x8] sm:$0xff] %v336_v17  ;;  %p736_p10 = por %p735_p8, %p734_p7 }
  0x33   : > { %348 = vst [vmem:[%s961_s7] sm:$0xff] %v346_v18  ;;  %p732_p6 = pneg %p731_p5 }
  0x35   : > { %p737_p13 = pnand %p736_p10, %p732_p6 }
  0x37   : > { %740 = shalt.err (!%p737_p13)
}
  0x38   : > { %585 = dma.vmem_to_hbm [thread:$0]  (%p909_p9), %s964_s27, 256, %s374_s6, %s351_s10   ;;  %349 = vst [vmem:[%s961_s7 + $0x8] sm:$0xff] %v347_v19 }
  0x39   : > { %s356_s24 = scalar_lea.sflag [#allocation9], %s935_s25  ;;  %s755_s8 = sshra.s32 %s968_s5, 4  ;;  %s756_s8 = int_to_ptr.hbm [resolvable:$true] %s755_s8 }
  0x3a   : > { %s757_s9 = scalar_lea.hbm %s756_s8, 16  ;;  %s761_s13 = scalar_lea.hbm %s1025_s4, 32 }
  0x3b   : > { %p758_p0 = scmp.ne.s32.totalorder %s756_s8, %s757_s9  ;;  %p762_p3 = scmp.lt.s32.totalorder %s756_s8, %s1025_s4 }
  0x3c   : > { %p763_p4 = scmp.lt.s32.totalorder %s761_s13, %s757_s9 }
  0x3d   : > { %p759_p1 = pnand %p758_p0, %p909_p9 }
  0x3e   : > { %p764_p5 = por %p763_p4, %p762_p3 }
  0x3f   : > { %p760_p2 = pneg %p759_p1 }
  0x41   : > { %p765_p6 = pnand %p764_p5, %p760_p2 }
  0x43   : > { %768 = shalt.err (!%p765_p6)
}
  0x44   : > { %586 = dma.vmem_to_hbm [thread:$0]  (%p909_p9), %s966_s12, 256, %s968_s5, %s356_s24  }
  0x45 PF: > { %s402_s25 = sand.u32 1, %s811_s15   ;;  %p597_p7 = pnand %p556_p12, %p916_p11 }
  0x46   : > { %s403_s27 = scalar_lea.sflag [#allocation4], %s402_s25 }
  0x47   : > { %p598_p8 = pneg %p597_p7 }
  0x49   : > { %802 = dma.done.wait (%p598_p8), %s403_s27, 256  }
  0x4a   : > { %804 = vsyncadd (%p598_p8), %s403_s27, 4294967040  ;;  %s413_s6 = scalar_lea.sflag [#allocation9], %s402_s25 }
  0x4b   : > { %806 = dma.done.wait (%p598_p8), %s413_s6, 256  }
  0x4c   : > { %808 = vsyncadd (%p598_p8), %s413_s6, 4294967040  ;;  %s27_s20 = sadd.s32 1, %s831_s20   ;;  %s1032_s28 = sld [smem:[#allocation14_spill]] }
  0x4d   : > { %p24_p10 = scmp.ge.s32.totalorder %s27_s20, 4   ;;  %s1033_s15 = smov %s815_s16 }
  0x4e   : > { %s1034_s16 = smov %s819_s17  ;;  %s1035_s17 = smov %s914_s29 }
  0x4f   : > { %s1036_s18 = smov %s827_s19  ;;  %26 = sbr.rel (!%p24_p10) target bundleno = 10 (0xa), region = 111 }
  0x52   : > { %s1037_s19 = smov %s1032_s28 }
  0x54   :  { %419 = vsyncpa [#allocation3], 1 }
  0x55   :  { %421 = vsyncpa [#allocation3 + $0x1], 1 }
  0x56   :  { %422 = vsyncpa [#allocation6], 1 }
  0x57   :  { %424 = vsyncpa [#allocation6 + $0x1], 1 }
  0x58   :  { %425 = vsyncpa [#allocation4], 1 }
  0x59   :  { %427 = vsyncpa [#allocation4 + $0x1], 1 }
  0x5a   :  { %428 = vsyncpa [#allocation9], 1 }
  0x5b   :  { %430 = vsyncpa [#allocation9 + $0x1], 1 }

</bundles_post_ra>
